<compile_context>
chip_gen: v6e
topology: v6e:2x2x1
jax: 0.10.0
libtpu: 0.0.40
codegen_flags: <defaults>
</compile_context>

<pallas_src>
import functools

import jax
import jax.numpy as jnp
from jax.experimental import pallas as pl
from jax.experimental.pallas import tpu as pltpu


# ----------------------------------------------------------------------------
# Gradient Reversal Layer: identity forward, -alpha * grad backward.
# ----------------------------------------------------------------------------
@functools.partial(jax.custom_vjp, nondiff_argnums=(1,))
def gradient_reversal(x, alpha):
    return x


def _grl_fwd(x, alpha):
    return x, None


def _grl_bwd(alpha, _, g):
    return (-alpha * g,)


gradient_reversal.defvjp(_grl_fwd, _grl_bwd)


# ----------------------------------------------------------------------------
# Fused MLP kernel: relu(x @ w1 + b1) ... @ wL + bL   (no ReLU on last layer)
# ----------------------------------------------------------------------------
def _make_fused_mlp_kernel(num_layers):
    def kernel(*refs):
        # refs = (x_ref, w1_ref, b1_ref, ..., wL_ref, bL_ref, o_ref)
        x_ref = refs[0]
        o_ref = refs[-1]
        h = x_ref[...]
        for l in range(num_layers):
            w_ref = refs[1 + 2 * l]
            b_ref = refs[2 + 2 * l]
            # bf16 MXU path with f32 accumulation; bias-add / ReLU stay f32.
            h = jnp.dot(h.astype(w_ref.dtype), w_ref[...],
                        preferred_element_type=jnp.float32)
            h = h + b_ref[...]                 # (1, Dout) broadcast over batch
            if l < num_layers - 1:
                h = jnp.maximum(h, 0.0)        # ReLU on hidden layers only
        o_ref[...] = h.astype(o_ref.dtype)

    return kernel


# ----------------------------------------------------------------------------
# Parameter init (nn.Linear-style), with lane-dense hidden padding.
# ----------------------------------------------------------------------------
def init_domain_classifier_params(key, input_dim=64, hidden_dims=(32,),
                                  output_dim=2, lane=128,
                                  weight_dtype=jnp.bfloat16):
    """U(-1/sqrt(fan_in), 1/sqrt(fan_in)) init, weights stored as (in, out).

    Hidden dims are zero-padded up to `lane` (128) so the in-kernel
    intermediates are lane-dense; the padded cols/rows are zero so the math is
    unchanged.  The final out-dim is NOT padded (output written as (B, 2)).
    Weights are stored in `weight_dtype` (bf16); biases stay f32.
    """
    dims = [input_dim] + list(hidden_dims) + [output_dim]
    padded = ([input_dim]
              + [-(-d // lane) * lane for d in hidden_dims]
              + [output_dim])
    params = []
    for i in range(len(dims) - 1):
        fan_in, fan_out = dims[i], dims[i + 1]
        pin, pout = padded[i], padded[i + 1]
        key, kw, kb = jax.random.split(key, 3)
        bound = 1.0 / (fan_in ** 0.5)
        w = jax.random.uniform(kw, (fan_in, fan_out), jnp.float32, -bound, bound)
        b = jax.random.uniform(kb, (1, fan_out), jnp.float32, -bound, bound)
        w = jnp.pad(w, ((0, pin - fan_in), (0, pout - fan_out)))
        b = jnp.pad(b, ((0, 0), (0, pout - fan_out)))
        params.append((w.astype(weight_dtype), b))
    return params


def _pick_batch_tile(batch, block_b):
    """Batch tile: whole batch if small, else >=2 balanced steps capped at block_b."""
    if batch <= 256:
        return batch                      # single block, latency bound
    half = -(-batch // 2)                 # ceil(B / 2): >= 2 grid steps (v7x)
    half = -(-half // 8) * 8              # sublane-aligned
    return min(block_b, half)


# ----------------------------------------------------------------------------
# Forward wrapper
# ----------------------------------------------------------------------------
def domain_classifier_forward(features, params, alpha=1.0, block_b=2048):
    """DomainClassifier forward: GRL (identity fwd, -alpha*grad bwd) -> fused MLP."""
    reversed_feats = gradient_reversal(features, alpha)

    B, Din = reversed_feats.shape
    num_layers = len(params)
    out_dim = params[-1][0].shape[1]

    tb = _pick_batch_tile(B, block_b)
    grid = (pl.cdiv(B, tb),)

    in_specs = [pl.BlockSpec((tb, Din), lambda i: (i, 0))]
    flat_params = []
    for w, b in params:
        din, dout = w.shape
        # Full blocks with constant index_map: stay VMEM-resident across steps.
        in_specs.append(pl.BlockSpec((din, dout), lambda i: (0, 0)))
        in_specs.append(pl.BlockSpec((1, dout), lambda i: (0, 0)))
        flat_params += [w, b]

    return pl.pallas_call(
        _make_fused_mlp_kernel(num_layers),
        out_shape=jax.ShapeDtypeStruct((B, out_dim), features.dtype),
        grid_spec=pltpu.PrefetchScalarGridSpec(
            num_scalar_prefetch=0,
            grid=grid,
            in_specs=in_specs,
            # Unpadded (tb, 2) output block: last dim == full array dim.
            out_specs=pl.BlockSpec((tb, out_dim), lambda i: (i, 0)),
        ),
        compiler_params=pltpu.CompilerParams(
            dimension_semantics=("parallel",)),
    )(reversed_feats, *flat_params)


if __name__ == "__main__":
    key = jax.random.PRNGKey(0)
    key, kx = jax.random.split(key)

    batch, input_dim, hidden_dims, output_dim = 8, 64, (32,), 2
    features = jax.random.normal(kx, (batch, input_dim), jnp.float32)
    params = init_domain_classifier_params(key, input_dim, hidden_dims,
                                           output_dim)

    out = domain_classifier_forward(features, params, alpha=1.0)
    out = jax.block_until_ready(out)

    # Plain-JAX reference of the same math (GRL is identity in forward,
    # bf16 operands with f32 accumulation, f32 bias/ReLU).
    ref = features
    for l, (w, b) in enumerate(params):
        ref = jnp.dot(ref.astype(w.dtype), w,
                      preferred_element_type=jnp.float32) + b
        if l < len(params) - 1:
            ref = jnp.maximum(ref, 0.0)

    assert out.shape == (batch, output_dim)
    assert jnp.allclose(out, ref, atol=1e-4, rtol=1e-4)
    print("KERNEL_OK")
</pallas_src>

<mosaic_0001>
module attributes {stable_mosaic.version = 11 : i64} {
  func.func @kernel(%arg0: i32, %arg1: memref<8x64xf32, #tpu.memory_space<vmem>>, %arg2: memref<64x128xbf16, #tpu.memory_space<vmem>>, %arg3: memref<1x128xf32, #tpu.memory_space<vmem>>, %arg4: memref<128x2xbf16, #tpu.memory_space<vmem>>, %arg5: memref<1x2xf32, #tpu.memory_space<vmem>>, %arg6: memref<8x2xf32, #tpu.memory_space<vmem>>) attributes {dimension_semantics = [#tpu.dimension_semantics<parallel>], iteration_bounds = array<i64: 1>, scalar_prefetch = 0 : i64, scratch_operands = 0 : i64, tpu.core_type = #tpu.core_type<tc>, window_params = [{transform_indices = @transform_0, window_bounds = array<i64: 8, 64>}, {pipeline_mode = #tpu.pipeline_mode<synchronous>, transform_indices = @transform_1, window_bounds = array<i64: 64, 128>}, {pipeline_mode = #tpu.pipeline_mode<synchronous>, transform_indices = @transform_2, window_bounds = array<i64: 1, 128>}, {pipeline_mode = #tpu.pipeline_mode<synchronous>, transform_indices = @transform_3, window_bounds = array<i64: 128, 2>}, {pipeline_mode = #tpu.pipeline_mode<synchronous>, transform_indices = @transform_4, window_bounds = array<i64: 1, 2>}, {transform_indices = @transform_5, window_bounds = array<i64: 8, 2>}]} {
    %c0 = arith.constant 0 : index
    %c0_0 = arith.constant 0 : index
    %0 = vector.load %arg1[%c0, %c0_0] : memref<8x64xf32, #tpu.memory_space<vmem>>, vector<8x64xf32>
    %1 = arith.truncf %0 : vector<8x64xf32> to vector<8x64xbf16>
    %c0_1 = arith.constant 0 : index
    %c0_2 = arith.constant 0 : index
    %2 = vector.load %arg2[%c0_1, %c0_2] : memref<64x128xbf16, #tpu.memory_space<vmem>>, vector<64x128xbf16>
    %cst = arith.constant dense<0.000000e+00> : vector<8x128xf32>
    %3 = tpu.matmul %1, %2, %cst {dimension_numbers = #tpu.dot_dimension_numbers<[1], [0], [0], [1], [0, 0, 1, 1], [], []>} : vector<8x64xbf16>, vector<64x128xbf16>, vector<8x128xf32> -> vector<8x128xf32>
    %c0_3 = arith.constant 0 : index
    %c0_4 = arith.constant 0 : index
    %4 = vector.load %arg3[%c0_3, %c0_4] : memref<1x128xf32, #tpu.memory_space<vmem>>, vector<1x128xf32>
    %5 = vector.broadcast %4 : vector<1x128xf32> to vector<8x128xf32>
    %6 = arith.addf %3, %5 : vector<8x128xf32>
    %cst_5 = arith.constant 0.000000e+00 : f32
    %7 = vector.broadcast %cst_5 : f32 to vector<8x128xf32>
    %8 = arith.maximumf %6, %7 : vector<8x128xf32>
    %9 = arith.truncf %8 : vector<8x128xf32> to vector<8x128xbf16>
    %c0_6 = arith.constant 0 : index
    %c0_7 = arith.constant 0 : index
    %10 = vector.load %arg4[%c0_6, %c0_7] : memref<128x2xbf16, #tpu.memory_space<vmem>>, vector<128x2xbf16>
    %cst_8 = arith.constant dense<0.000000e+00> : vector<8x2xf32>
    %11 = tpu.matmul %9, %10, %cst_8 {dimension_numbers = #tpu.dot_dimension_numbers<[1], [0], [0], [1], [0, 0, 1, 1], [], []>} : vector<8x128xbf16>, vector<128x2xbf16>, vector<8x2xf32> -> vector<8x2xf32>
    %c0_9 = arith.constant 0 : index
    %c0_10 = arith.constant 0 : index
    %12 = vector.load %arg5[%c0_9, %c0_10] : memref<1x2xf32, #tpu.memory_space<vmem>>, vector<1x2xf32>
    %13 = vector.broadcast %12 : vector<1x2xf32> to vector<8x2xf32>
    %14 = arith.addf %11, %13 : vector<8x2xf32>
    %c0_11 = arith.constant 0 : index
    %c0_12 = arith.constant 0 : index
    %15 = vector.load %arg6[%c0_11, %c0_12] : memref<8x2xf32, #tpu.memory_space<vmem>>, vector<8x2xf32>
    tpu.vector_store %arg6[%c0_11, %c0_12], %14 {strides = array<i32>} : memref<8x2xf32, #tpu.memory_space<vmem>>, vector<8x2xf32>,
    return
  }
  func.func @transform_0(%arg0: i32) -> (i32, i32) {
    %c0_i32 = arith.constant 0 : i32
    %c0_i32_0 = arith.constant 0 : i32
    return %arg0, %c0_i32 : i32, i32
  }
  func.func @transform_1(%arg0: i32) -> (i32, i32) {
    %c0_i32 = arith.constant 0 : i32
    %c0_i32_0 = arith.constant 0 : i32
    %c0_i32_1 = arith.constant 0 : i32
    return %c0_i32, %c0_i32_0 : i32, i32
  }
  func.func @transform_2(%arg0: i32) -> (i32, i32) {
    %c0_i32 = arith.constant 0 : i32
    %c0_i32_0 = arith.constant 0 : i32
    %c0_i32_1 = arith.constant 0 : i32
    return %c0_i32, %c0_i32_0 : i32, i32
  }
  func.func @transform_3(%arg0: i32) -> (i32, i32) {
    %c0_i32 = arith.constant 0 : i32
    %c0_i32_0 = arith.constant 0 : i32
    %c0_i32_1 = arith.constant 0 : i32
    return %c0_i32, %c0_i32_0 : i32, i32
  }
  func.func @transform_4(%arg0: i32) -> (i32, i32) {
    %c0_i32 = arith.constant 0 : i32
    %c0_i32_0 = arith.constant 0 : i32
    %c0_i32_1 = arith.constant 0 : i32
    return %c0_i32, %c0_i32_0 : i32, i32
  }
  func.func @transform_5(%arg0: i32) -> (i32, i32) {
    %c0_i32 = arith.constant 0 : i32
    %c0_i32_0 = arith.constant 0 : i32
    return %arg0, %c0_i32 : i32, i32
  }
}

</mosaic_0001>

<bundles_post_ra>
// kernel: tpu_custom_call.1
= control target key start
LH: loop header
LB: loop body
LE: loop exit
PB: predicated region body
PF: predicated region fallthrough
CT: control target
= control target key end

     0   :  { %v300_v0 = vmov 0.0   ;;  %vm301_vm0 = vmmov 0   ;;  %vm62_vm1 = vcmask 523264   ;;  %vm219_vm2 = vcmask 15360   ;;  %s380_s1 = inlined_call_operand.vmem [shape: bf16[64,128], index: 1, kind: input, shape index: {}]   ;;  %s381_s3 = inlined_call_operand.vmem [shape: bf16[128,2], index: 3, kind: input, shape index: {}]   ;;  %s382_s0 = inlined_call_operand.vmem [shape: f32[8,64], index: 0, kind: input, shape index: {}]   ;;  %s383_s2 = inlined_call_operand.vmem [shape: f32[1,128], index: 2, kind: input, shape index: {}]   ;;  %s384_s4 = inlined_call_operand.vmem [shape: f32[1,2], index: 4, kind: input, shape index: {}]   ;;  %s385_s5 = inlined_call_operand.vmem [shape: f32[8,2], index: 5, kind: output, shape index: {}]  }
   0x1   :  { %254 = vmatprep.subr.bf16.mxu0 %v300_v0  ;;  %v288_v1 = vld [vmem:[%s380_s1 + $0x18] sm:$0xff]   ;;  %262 = vmatprep.mubr.msk.bf16.mxu0 %vm301_vm0, %v300_v0  ;;  %v289_v2 = vld [vmem:[%s380_s1 + $0x10] sm:$0xff]   ;;  %v290_v4 = vld [vmem:[%s380_s1 + $0x8] sm:$0xff]  }
   0x2   :  { %266 = vmatprep.subr.bf16.mxu1 %v300_v0  ;;  %282 = vmatprep.mubr.msk.bf16.mxu1 %vm301_vm0, %v300_v0  ;;  %v292_v3 = vld [vmem:[%s381_s3 + $0x38] sm:$0xff]   ;;  %v293_v5 = vld [vmem:[%s381_s3 + $0x30] sm:$0xff]   ;;  %v291_v6 = vld [vmem:[%s380_s1] sm:$0xff]  }
   0x3   :  { %255 = vmatpush3.bf16.msra.mxu0 %v288_v1  ;;  %267 = vmatpush3.bf16.msra.mxu1 %v292_v3  ;;  %v21_v7 = vld [vmem:[%s382_s0] sm:$0xff]  ;;  %v294_v8 = vld [vmem:[%s381_s3 + $0x28] sm:$0xff]   ;;  %v296_v11 = vld [vmem:[%s381_s3 + $0x18] sm:$0xff]  }
   0x4   :  { %256 = vmatprep.subr.bf16.mxu0 %v300_v0  ;;  %268 = vmatprep.subr.bf16.mxu1 %v300_v0  ;;  %v22_v9 = vpack.c.bf16 %v21_v7, %v21_v7  ;;  %v295_v10 = vld [vmem:[%s381_s3 + $0x20] sm:$0xff]   ;;  %v297_v12 = vld [vmem:[%s381_s3 + $0x10] sm:$0xff]   ;;  %v298_v13 = vld [vmem:[%s381_s3 + $0x8] sm:$0xff]  }
   0x5   :  { %v299_v14 = vld [vmem:[%s381_s3] sm:$0xff]  }
   0x6   :  { %v225_v15 = vld [vmem:[%s383_s2] ss:$0 sm:$0xff] }
   0x7   :  { %257 = vmatpush3.bf16.msra.mxu0 %v289_v2  ;;  %269 = vmatpush3.bf16.msra.mxu1 %v293_v5  ;;  %v231_v23 = vld [vmem:[%s384_s4] ss:$0 sm:$0xff] }
   0x8   :  { %258 = vmatprep.subr.bf16.mxu0 %v300_v0  ;;  %270 = vmatprep.subr.bf16.mxu1 %v300_v0 }
   0xb   :  { %259 = vmatpush3.bf16.msra.mxu0 %v290_v4  ;;  %271 = vmatpush3.bf16.msra.mxu1 %v294_v8 }
   0xc   :  { %260 = vmatprep.subr.bf16.mxu0 %v300_v0  ;;  %272 = vmatprep.subr.bf16.mxu1 %v300_v0 }
   0xf   :  { %261 = vmatpush3.bf16.msra.mxu0 %v291_v6  ;;  %273 = vmatpush3.bf16.msra.mxu1 %v295_v10 }
  0x10   :  { %274 = vmatprep.subr.bf16.mxu1 %v300_v0 }
  0x12   :  { %263 = vmatmul.mubr.msk.bf16.vlgmr.msra.gmra.mxu0 %vm62_vm1, %v22_v9 }
  0x13   :  { %275 = vmatpush3.bf16.msra.mxu1 %v296_v11 }
  0x14   :  { %276 = vmatprep.subr.bf16.mxu1 %v300_v0 }
  0x17   :  { %277 = vmatpush3.bf16.msra.mxu1 %v297_v12 }
  0x18   :  { %278 = vmatprep.subr.bf16.mxu1 %v300_v0 }
  0x1b   :  { %279 = vmatpush3.bf16.msra.mxu1 %v298_v13 }
  0x1c   :  { %280 = vmatprep.subr.bf16.mxu1 %v300_v0 }
  0x1f   :  { %281 = vmatpush3.bf16.msra.mxu1 %v299_v14 }
  0xd2   :  { %v100_v16 = vpop.f32.mrf.mxu0 }
  0xd3   :  { %v101_v17 = vadd.f32 %v225_v15, %v100_v16 }
  0xd4   :  { %v264_v18 = vpop.f32.mrf.mxu0 }
  0xd5   :  { %v106_v19 = vmax.f32 %v101_v17, 0.0 }
  0xd6   :  { %v103_v20 = vpop.f32.mrf.mxu0 }
  0xd7   :  { %v107_v21 = vpack.c.bf16 %v106_v19, %v106_v19 }
  0xd8   :  { %v265_v22 = vpop.f32.mrf.mxu0 }
  0xd9   :  { %283 = vmatmul.mubr.bf16.vlgmr.msra.gmra.mxu1 %v107_v21 }
 0x199   :  { %v213_v24 = vpop.f32.mrf.mxu1 }
 0x19a   :  { %v214_v25 = vadd.f32 %v231_v23, %v213_v24 }
 0x19b   :  { %v284_v26 = vpop.f32.mrf.mxu1 }
 0x19c   :  { %220 = vst.msk [vmem:[%s385_s5] sm:$0xff] %vm219_vm2, %v214_v25 }
 0x19d   :  { %v216_v27 = vpop.f32.mrf.mxu1 }
 0x19f   :  { %v285_v28 = vpop.f32.mrf.mxu1 }

</bundles_post_ra>
